<compile_context>
chip_gen: v7x
topology: tpu7x:2x2x1
jax: 0.10.0
libtpu: 0.0.40
codegen_flags: <defaults>
</compile_context>

<pallas_src>
import jax
import jax.numpy as jnp
from jax.experimental import pallas as pl
from jax.experimental.pallas import tpu as pltpu

LANE = 128


def _round_up(n, m):
    return ((n + m - 1) // m) * m


def actor_kernel(x_ref, w1_ref, b1_ref, w2_ref, b2_ref,
                 wmu_ref, bmu_ref, scale_ref, bias_ref, out_ref):
    # fc1: bf16 MXU matmul with f32 accumulation; bias + ReLU in f32.
    h1 = jnp.dot(x_ref[...], w1_ref[...], preferred_element_type=jnp.float32)
    h1 = jnp.maximum(h1 + b1_ref[...], 0.0)
    # fc2
    h2 = jnp.dot(h1.astype(jnp.bfloat16), w2_ref[...],
                 preferred_element_type=jnp.float32)
    h2 = jnp.maximum(h2 + b2_ref[...], 0.0)
    # fc_mu (head padded to 128 lanes) + tanh
    mu = jnp.dot(h2.astype(jnp.bfloat16), wmu_ref[...],
                 preferred_element_type=jnp.float32)
    mu = jnp.tanh(mu + bmu_ref[...])
    # action rescaling; padded lanes carry scale=0 / bias=0 and are sliced off
    # in the wrapper.
    out_ref[...] = mu * scale_ref[...] + bias_ref[...]


def actor_forward(x, kparams):
    """x: (B, obs_dim). kparams: output of pack_params()."""
    B, obs_dim = x.shape
    H = kparams["w1"].shape[1]
    act_pad = kparams["w_mu"].shape[1]
    act_dim = kparams["act_dim"]

    # Batch tile: multiple of 8 (sublane), capped at 256 (ample MXU M-dim).
    tile_b = 256 if B >= 256 else _round_up(B, 8)
    padded_b = _round_up(B, tile_b)
    num_tiles = padded_b // tile_b

    x_p = x.astype(jnp.bfloat16)
    if padded_b != B:
        x_p = jnp.pad(x_p, ((0, padded_b - B), (0, 0)))

    # Weights / biases: constant block index -> stay resident in VMEM.
    const2d = lambda shape: pl.BlockSpec(shape, lambda i: (0, 0))

    out_padded = pl.pallas_call(
        actor_kernel,
        out_shape=jax.ShapeDtypeStruct((padded_b, act_pad), jnp.float32),
        grid=(num_tiles,),
        in_specs=[
            pl.BlockSpec((tile_b, obs_dim), lambda i: (i, 0)),   # x tile
            const2d((obs_dim, H)),                               # w1 (bf16)
            const2d((1, H)),                                     # b1 (f32)
            const2d((H, H)),                                     # w2 (bf16)
            const2d((1, H)),                                     # b2 (f32)
            const2d((H, act_pad)),                               # w_mu (bf16)
            const2d((1, act_pad)),                               # b_mu (f32)
            const2d((1, act_pad)),                               # action_scale
            const2d((1, act_pad)),                               # action_bias
        ],
        out_specs=pl.BlockSpec((tile_b, act_pad), lambda i: (i, 0)),
        compiler_params=pltpu.CompilerParams(
            dimension_semantics=("parallel",)),
    )(
        x_p,
        kparams["w1"], kparams["b1"],
        kparams["w2"], kparams["b2"],
        kparams["w_mu"], kparams["b_mu"],
        kparams["action_scale"], kparams["action_bias"],
    )
    return out_padded[:B, :act_dim]


def init_params(key, obs_dim, act_dim, hidden=256,
                action_low=-2.0, action_high=2.0):
    """f32 parameters matching PyTorch nn.Linear default init (weights stored
    as (in, out), i.e. transposed vs. PyTorch's (out, in))."""
    ks = jax.random.split(key, 6)

    def linear(kw, kb, fan_in, fan_out):
        bound = 1.0 / jnp.sqrt(float(fan_in))
        w = jax.random.uniform(kw, (fan_in, fan_out), jnp.float32, -bound, bound)
        b = jax.random.uniform(kb, (1, fan_out), jnp.float32, -bound, bound)
        return w, b

    w1, b1 = linear(ks[0], ks[1], obs_dim, hidden)
    w2, b2 = linear(ks[2], ks[3], hidden, hidden)
    w_mu, b_mu = linear(ks[4], ks[5], hidden, act_dim)

    action_scale = jnp.full((1, act_dim), (action_high - action_low) / 2.0,
                            jnp.float32)
    action_bias = jnp.full((1, act_dim), (action_high + action_low) / 2.0,
                           jnp.float32)

    return dict(w1=w1, b1=b1, w2=w2, b2=b2, w_mu=w_mu, b_mu=b_mu,
                action_scale=action_scale, action_bias=action_bias)


def pack_params(p):
    """Kernel-ready params: bf16 weights for the MXU, mu head padded to
    a 128-lane multiple (zeros), biases / scale / bias kept in f32."""
    act_dim = p["b_mu"].shape[-1]
    act_pad = _round_up(act_dim, LANE)
    pad = act_pad - act_dim
    pad_cols = lambda a: jnp.pad(a, ((0, 0), (0, pad)))

    return dict(
        w1=p["w1"].astype(jnp.bfloat16),
        b1=p["b1"],
        w2=p["w2"].astype(jnp.bfloat16),
        b2=p["b2"],
        w_mu=pad_cols(p["w_mu"]).astype(jnp.bfloat16),
        b_mu=pad_cols(p["b_mu"]),
        action_scale=pad_cols(p["action_scale"]),
        action_bias=pad_cols(p["action_bias"]),
        act_dim=act_dim,
    )


def reference_forward(x, p):
    h1 = jnp.maximum(x @ p["w1"] + p["b1"], 0.0)
    h2 = jnp.maximum(h1 @ p["w2"] + p["b2"], 0.0)
    mu = jnp.tanh(h2 @ p["w_mu"] + p["b_mu"])
    return mu * p["action_scale"] + p["action_bias"]


if __name__ == "__main__":
    key = jax.random.PRNGKey(0)
    k_x, k_p = jax.random.split(key)

    batch = 8        # small per-step RL inference batch
    obs_dim = 16     # flattened Box observation space
    act_dim = 4      # continuous action space

    params = init_params(k_p, obs_dim, act_dim)
    kparams = pack_params(params)
    x = jax.random.normal(k_x, (batch, obs_dim), jnp.float32)

    out = actor_forward(x, kparams)
    jax.block_until_ready(out)

    ref = reference_forward(x, params)
    assert out.shape == (batch, act_dim)
    # bf16 MXU inputs with f32 accumulation -> relaxed tolerance vs f32 ref.
    assert jnp.allclose(out, ref, atol=5e-2, rtol=5e-2), \
        float(jnp.max(jnp.abs(out - ref)))

    print("KERNEL_OK")
</pallas_src>

<mosaic_0001>
module attributes {stable_mosaic.version = 11 : i64} {
  func.func @actor_kernel(%arg0: i32, %arg1: memref<8x16xbf16, #tpu.memory_space<vmem>>, %arg2: memref<16x256xbf16, #tpu.memory_space<vmem>>, %arg3: memref<1x256xf32, #tpu.memory_space<vmem>>, %arg4: memref<256x256xbf16, #tpu.memory_space<vmem>>, %arg5: memref<1x256xf32, #tpu.memory_space<vmem>>, %arg6: memref<256x128xbf16, #tpu.memory_space<vmem>>, %arg7: memref<1x128xf32, #tpu.memory_space<vmem>>, %arg8: memref<1x128xf32, #tpu.memory_space<vmem>>, %arg9: memref<1x128xf32, #tpu.memory_space<vmem>>, %arg10: memref<8x128xf32, #tpu.memory_space<vmem>>) attributes {dimension_semantics = [#tpu.dimension_semantics<parallel>], iteration_bounds = array<i64: 1>, scalar_prefetch = 0 : i64, scratch_operands = 0 : i64, tpu.core_type = #tpu.core_type<tc>, window_params = [{transform_indices = @transform_0, window_bounds = array<i64: 8, 16>}, {pipeline_mode = #tpu.pipeline_mode<synchronous>, transform_indices = @transform_1, window_bounds = array<i64: 16, 256>}, {pipeline_mode = #tpu.pipeline_mode<synchronous>, transform_indices = @transform_2, window_bounds = array<i64: 1, 256>}, {pipeline_mode = #tpu.pipeline_mode<synchronous>, transform_indices = @transform_3, window_bounds = array<i64: 256, 256>}, {pipeline_mode = #tpu.pipeline_mode<synchronous>, transform_indices = @transform_4, window_bounds = array<i64: 1, 256>}, {pipeline_mode = #tpu.pipeline_mode<synchronous>, transform_indices = @transform_5, window_bounds = array<i64: 256, 128>}, {pipeline_mode = #tpu.pipeline_mode<synchronous>, transform_indices = @transform_6, window_bounds = array<i64: 1, 128>}, {pipeline_mode = #tpu.pipeline_mode<synchronous>, transform_indices = @transform_7, window_bounds = array<i64: 1, 128>}, {pipeline_mode = #tpu.pipeline_mode<synchronous>, transform_indices = @transform_8, window_bounds = array<i64: 1, 128>}, {transform_indices = @transform_9, window_bounds = array<i64: 8, 128>}]} {
    %c0 = arith.constant 0 : index
    %c0_0 = arith.constant 0 : index
    %0 = vector.load %arg1[%c0, %c0_0] : memref<8x16xbf16, #tpu.memory_space<vmem>>, vector<8x16xbf16>
    %c0_1 = arith.constant 0 : index
    %c0_2 = arith.constant 0 : index
    %1 = vector.load %arg2[%c0_1, %c0_2] : memref<16x256xbf16, #tpu.memory_space<vmem>>, vector<16x256xbf16>
    %cst = arith.constant dense<0.000000e+00> : vector<8x256xf32>
    %2 = tpu.matmul %0, %1, %cst {dimension_numbers = #tpu.dot_dimension_numbers<[1], [0], [0], [1], [0, 0, 1, 1], [], []>} : vector<8x16xbf16>, vector<16x256xbf16>, vector<8x256xf32> -> vector<8x256xf32>
    %c0_3 = arith.constant 0 : index
    %c0_4 = arith.constant 0 : index
    %3 = vector.load %arg3[%c0_3, %c0_4] : memref<1x256xf32, #tpu.memory_space<vmem>>, vector<1x256xf32>
    %4 = vector.broadcast %3 : vector<1x256xf32> to vector<8x256xf32>
    %5 = arith.addf %2, %4 : vector<8x256xf32>
    %cst_5 = arith.constant 0.000000e+00 : f32
    %6 = vector.broadcast %cst_5 : f32 to vector<8x256xf32>
    %7 = arith.maximumf %5, %6 : vector<8x256xf32>
    %8 = arith.truncf %7 : vector<8x256xf32> to vector<8x256xbf16>
    %c0_6 = arith.constant 0 : index
    %c0_7 = arith.constant 0 : index
    %9 = vector.load %arg4[%c0_6, %c0_7] : memref<256x256xbf16, #tpu.memory_space<vmem>>, vector<256x256xbf16>
    %cst_8 = arith.constant dense<0.000000e+00> : vector<8x256xf32>
    %10 = tpu.matmul %8, %9, %cst_8 {dimension_numbers = #tpu.dot_dimension_numbers<[1], [0], [0], [1], [0, 0, 1, 1], [], []>} : vector<8x256xbf16>, vector<256x256xbf16>, vector<8x256xf32> -> vector<8x256xf32>
    %c0_9 = arith.constant 0 : index
    %c0_10 = arith.constant 0 : index
    %11 = vector.load %arg5[%c0_9, %c0_10] : memref<1x256xf32, #tpu.memory_space<vmem>>, vector<1x256xf32>
    %12 = vector.broadcast %11 : vector<1x256xf32> to vector<8x256xf32>
    %13 = arith.addf %10, %12 : vector<8x256xf32>
    %cst_11 = arith.constant 0.000000e+00 : f32
    %14 = vector.broadcast %cst_11 : f32 to vector<8x256xf32>
    %15 = arith.maximumf %13, %14 : vector<8x256xf32>
    %16 = arith.truncf %15 : vector<8x256xf32> to vector<8x256xbf16>
    %c0_12 = arith.constant 0 : index
    %c0_13 = arith.constant 0 : index
    %17 = vector.load %arg6[%c0_12, %c0_13] : memref<256x128xbf16, #tpu.memory_space<vmem>>, vector<256x128xbf16>
    %cst_14 = arith.constant dense<0.000000e+00> : vector<8x128xf32>
    %18 = tpu.matmul %16, %17, %cst_14 {dimension_numbers = #tpu.dot_dimension_numbers<[1], [0], [0], [1], [0, 0, 1, 1], [], []>} : vector<8x256xbf16>, vector<256x128xbf16>, vector<8x128xf32> -> vector<8x128xf32>
    %c0_15 = arith.constant 0 : index
    %c0_16 = arith.constant 0 : index
    %19 = vector.load %arg7[%c0_15, %c0_16] : memref<1x128xf32, #tpu.memory_space<vmem>>, vector<1x128xf32>
    %20 = vector.broadcast %19 : vector<1x128xf32> to vector<8x128xf32>
    %21 = arith.addf %18, %20 : vector<8x128xf32>
    %22 = math.tanh %21 : vector<8x128xf32>
    %c0_17 = arith.constant 0 : index
    %c0_18 = arith.constant 0 : index
    %23 = vector.load %arg8[%c0_17, %c0_18] : memref<1x128xf32, #tpu.memory_space<vmem>>, vector<1x128xf32>
    %24 = vector.broadcast %23 : vector<1x128xf32> to vector<8x128xf32>
    %25 = arith.mulf %22, %24 : vector<8x128xf32>
    %c0_19 = arith.constant 0 : index
    %c0_20 = arith.constant 0 : index
    %26 = vector.load %arg9[%c0_19, %c0_20] : memref<1x128xf32, #tpu.memory_space<vmem>>, vector<1x128xf32>
    %27 = vector.broadcast %26 : vector<1x128xf32> to vector<8x128xf32>
    %28 = arith.addf %25, %27 : vector<8x128xf32>
    %c0_21 = arith.constant 0 : index
    %c0_22 = arith.constant 0 : index
    %29 = vector.load %arg10[%c0_21, %c0_22] : memref<8x128xf32, #tpu.memory_space<vmem>>, vector<8x128xf32>
    tpu.vector_store %arg10[%c0_21, %c0_22], %28 {strides = array<i32>} : memref<8x128xf32, #tpu.memory_space<vmem>>, vector<8x128xf32>,
    return
  }
  func.func @transform_0(%arg0: i32) -> (i32, i32) {
    %c0_i32 = arith.constant 0 : i32
    %c0_i32_0 = arith.constant 0 : i32
    return %arg0, %c0_i32 : i32, i32
  }
  func.func @transform_1(%arg0: i32) -> (i32, i32) {
    %c0_i32 = arith.constant 0 : i32
    %c0_i32_0 = arith.constant 0 : i32
    %c0_i32_1 = arith.constant 0 : i32
    return %c0_i32, %c0_i32_0 : i32, i32
  }
  func.func @transform_2(%arg0: i32) -> (i32, i32) {
    %c0_i32 = arith.constant 0 : i32
    %c0_i32_0 = arith.constant 0 : i32
    %c0_i32_1 = arith.constant 0 : i32
    return %c0_i32, %c0_i32_0 : i32, i32
  }
  func.func @transform_3(%arg0: i32) -> (i32, i32) {
    %c0_i32 = arith.constant 0 : i32
    %c0_i32_0 = arith.constant 0 : i32
    %c0_i32_1 = arith.constant 0 : i32
    return %c0_i32, %c0_i32_0 : i32, i32
  }
  func.func @transform_4(%arg0: i32) -> (i32, i32) {
    %c0_i32 = arith.constant 0 : i32
    %c0_i32_0 = arith.constant 0 : i32
    %c0_i32_1 = arith.constant 0 : i32
    return %c0_i32, %c0_i32_0 : i32, i32
  }
  func.func @transform_5(%arg0: i32) -> (i32, i32) {
    %c0_i32 = arith.constant 0 : i32
    %c0_i32_0 = arith.constant 0 : i32
    %c0_i32_1 = arith.constant 0 : i32
    return %c0_i32, %c0_i32_0 : i32, i32
  }
  func.func @transform_6(%arg0: i32) -> (i32, i32) {
    %c0_i32 = arith.constant 0 : i32
    %c0_i32_0 = arith.constant 0 : i32
    %c0_i32_1 = arith.constant 0 : i32
    return %c0_i32, %c0_i32_0 : i32, i32
  }
  func.func @transform_7(%arg0: i32) -> (i32, i32) {
    %c0_i32 = arith.constant 0 : i32
    %c0_i32_0 = arith.constant 0 : i32
    %c0_i32_1 = arith.constant 0 : i32
    return %c0_i32, %c0_i32_0 : i32, i32
  }
  func.func @transform_8(%arg0: i32) -> (i32, i32) {
    %c0_i32 = arith.constant 0 : i32
    %c0_i32_0 = arith.constant 0 : i32
    %c0_i32_1 = arith.constant 0 : i32
    return %c0_i32, %c0_i32_0 : i32, i32
  }
  func.func @transform_9(%arg0: i32) -> (i32, i32) {
    %c0_i32 = arith.constant 0 : i32
    %c0_i32_0 = arith.constant 0 : i32
    return %arg0, %c0_i32 : i32, i32
  }
}

</mosaic_0001>

<bundles_post_ra>
// kernel: tpu_custom_call.1
= control target key start
LH: loop header
LB: loop body
LE: loop exit
PB: predicated region body
PF: predicated region fallthrough
CT: control target
= control target key end

     0   :  { %14 = vsyncpa [#allocation3], 0  ;;  %s1034_s0 = inlined_call_operand.hbm [shape: bf16[8,16], index: 0, kind: input, shape index: {}]   ;;  %s1035_s1 = inlined_call_operand.hbm [shape: bf16[16,256], index: 1, kind: input, shape index: {}]   ;;  %s1036_s2 = inlined_call_operand.vmem [shape: f32[1,256], index: 2, kind: input, shape index: {}]   ;;  %s1037_s3 = inlined_call_operand.hbm [shape: bf16[256,256], index: 3, kind: input, shape index: {}]   ;;  %s1038_s4 = inlined_call_operand.vmem [shape: f32[1,256], index: 4, kind: input, shape index: {}]   ;;  %s1039_s5 = inlined_call_operand.hbm [shape: bf16[256,128], index: 5, kind: input, shape index: {}]   ;;  %s1040_s6 = inlined_call_operand.vmem [shape: f32[1,128], index: 6, kind: input, shape index: {}]   ;;  %s1041_s7 = inlined_call_operand.vmem [shape: f32[1,128], index: 7, kind: input, shape index: {}]   ;;  %s1042_s8 = inlined_call_operand.vmem [shape: f32[1,128], index: 8, kind: input, shape index: {}]   ;;  %s1043_s9 = inlined_call_operand.hbm [shape: f32[8,128], index: 9, kind: output, shape index: {}]  }
   0x1   :  { %15 = vsyncpa [#allocation6], 0 }
   0x2   :  { %16 = vsyncpa [#allocation9], 0 }
   0x3   :  { %17 = vsyncpa [#allocation4], 0  ;;  %s893_s30 = smov [#allocation5]   ;;  %s775_s13 = scalar_lea.hbm %s1035_s1, 256 }
   0x4   :  { %s33_s10 = sshll.u32 %s893_s30, 4  ;;  %p776_p0 = scmp.ne.s32.totalorder %s1035_s1, %s775_s13  ;;  %s34_s10 = int_to_ptr.vmem [resolvable:$true] %s33_s10 }
   0x5   :  { %p779_p1 = scmp.lt.u32.totalorder %s775_s13, %s1035_s1 }
   0x7   :  { %p781_p2 = pnand %p779_p1, %p776_p0 }
   0x9   :  { %784 = shalt.err (!%p781_p2)
}
   0xa   :  { %s785_s18 = scalar_lea.vmem %s34_s10, 256  ;;  %p790_p4 = scmp.lt.s32.totalorder %s34_s10, %s34_s10 }
   0xb   :  { %p786_p3 = scmp.ne.s32.totalorder %s34_s10, %s785_s18  ;;  %p791_p5 = scmp.lt.s32.totalorder %s785_s18, %s785_s18 }
   0xd   :  { %p792_p6 = por %p791_p5, %p790_p4 }
   0xf   :  { %p793_p7 = pnand %p792_p6, %p786_p3 }
  0x11   :  { %796 = shalt.err (!%p793_p7)
}
  0x12   :  { %s894_s19 = smov 128   ;;  %s895_s20 = smov 8  }
  0x13   :  { %39 = dma.hbm_to_vmem [thread:$0]  %s1035_s1, 256, %s34_s10, [#allocation6], %s894_s19, %s894_s19, %s895_s20  }
  0x14   :  { %s896_s23 = smov [#allocation2]   ;;  %s897_s25 = smov [#allocation7]  }
  0x15   :  { %s24_s24 = sshll.u32 %s896_s23, 4  ;;  %s47_s26 = sshll.u32 %s897_s25, 4  ;;  %s25_s24 = int_to_ptr.vmem [resolvable:$true] %s24_s24  ;;  %s48_s26 = int_to_ptr.vmem [resolvable:$true] %s47_s26 }
  0x16   :  { %s797_s29 = scalar_lea.hbm %s1034_s0, 64 }
  0x17   :  { %p798_p8 = scmp.ne.s32.totalorder %s1034_s0, %s797_s29  ;;  %p801_p9 = scmp.lt.u32.totalorder %s797_s29, %s1034_s0 }
  0x19   :  { %p803_p10 = pnand %p801_p9, %p798_p8 }
  0x1b   :  { %806 = shalt.err (!%p803_p10)
}
  0x1c   :  { %s807_s1 = scalar_lea.vmem %s25_s24, 64  ;;  %p812_p12 = scmp.lt.s32.totalorder %s25_s24, %s25_s24 }
  0x1d   :  { %p808_p11 = scmp.ne.s32.totalorder %s25_s24, %s807_s1  ;;  %p813_p13 = scmp.lt.s32.totalorder %s807_s1, %s807_s1 }
  0x1f   :  { %p814_p0 = por %p813_p13, %p812_p12 }
  0x21   :  { %p815_p1 = pnand %p814_p0, %p808_p11 }
  0x23   :  { %818 = shalt.err (!%p815_p1)
}
  0x24   :  { %27 = dma.hbm_to_vmem [thread:$0]  %s1034_s0, 64, %s25_s24, [#allocation3]  }
  0x25   :  { %s819_s17 = scalar_lea.hbm %s1037_s3, 4096 }
  0x26   :  { %p820_p2 = scmp.ne.s32.totalorder %s1037_s3, %s819_s17  ;;  %p823_p3 = scmp.lt.u32.totalorder %s819_s17, %s1037_s3 }
  0x28   :  { %p825_p4 = pnand %p823_p3, %p820_p2 }
  0x2a   :  { %828 = shalt.err (!%p825_p4)
}
  0x2b   :  { %s829_s25 = scalar_lea.vmem %s48_s26, 4096  ;;  %p834_p6 = scmp.lt.s32.totalorder %s48_s26, %s48_s26 }
  0x2c   :  { %p830_p5 = scmp.ne.s32.totalorder %s48_s26, %s829_s25  ;;  %p835_p7 = scmp.lt.s32.totalorder %s829_s25, %s829_s25 }
  0x2e   :  { %p836_p8 = por %p835_p7, %p834_p6 }
  0x30   :  { %p837_p9 = pnand %p836_p8, %p830_p5 }
  0x32   :  { %840 = shalt.err (!%p837_p9)
}
  0x33   :  { %53 = dma.hbm_to_vmem [thread:$0]  %s1037_s3, 4096, %s48_s26, [#allocation6], %s894_s19, %s894_s19, %s895_s20  }
  0x34   :  { %s898_s27 = smov [#allocation8]   ;;  %s841_s11 = scalar_lea.hbm %s1039_s5, 2048 }
  0x35   :  { %s61_s28 = sshll.u32 %s898_s27, 4  ;;  %p842_p10 = scmp.ne.s32.totalorder %s1039_s5, %s841_s11  ;;  %s62_s28 = int_to_ptr.vmem [resolvable:$true] %s61_s28 }
  0x36   :  { %p845_p11 = scmp.lt.u32.totalorder %s841_s11, %s1039_s5 }
  0x38   :  { %p847_p12 = pnand %p845_p11, %p842_p10 }
  0x3a   :  { %850 = shalt.err (!%p847_p12)
}
  0x3b   :  { %s851_s14 = scalar_lea.vmem %s62_s28, 2048  ;;  %p856_p0 = scmp.lt.s32.totalorder %s62_s28, %s62_s28 }
  0x3c   :  { %p852_p13 = scmp.ne.s32.totalorder %s62_s28, %s851_s14  ;;  %p857_p1 = scmp.lt.s32.totalorder %s851_s14, %s851_s14 }
  0x3e   :  { %p858_p2 = por %p857_p1, %p856_p0 }
  0x40   :  { %p859_p3 = pnand %p858_p2, %p852_p13 }
  0x42   :  { %862 = shalt.err (!%p859_p3)
}
  0x43   :  { %s899_s3 = smov 64   ;;  %s900_s19 = smov 4  }
  0x44   :  { %67 = dma.hbm_to_vmem [thread:$0]  %s1039_s5, 2048, %s62_s28, [#allocation9], %s899_s3, %s899_s3, %s900_s19  }
  0x45   :  { %885 = dma.done.wait [#allocation3], 64  }
  0x46   :  { %886 = vsyncadd [#allocation3], 4294967232 }
  0x47   :  { %887 = dma.done.wait [#allocation6], 4352  }
  0x48   :  { %888 = vsyncadd [#allocation6], 4294962944 }
  0x49   :  { %889 = dma.done.wait [#allocation9], 2048  }
  0x4a   :  { %890 = vsyncadd [#allocation9], 4294965248  ;;  %v901_v0 = vmov 0   ;;  %v706_v1 = vld [vmem:[#allocation5 + $0x4] ss:$8 sps:$4 sm:$0xff]   ;;  %vm112_vm0 = vcmask 130048   ;;  %v92_v48 = vlaneseq }
  0x4b   :  { %148 = vmatprep.mubr.bf16.mxu0 %v901_v0  ;;  %v708_v2 = vld [vmem:[#allocation5] ss:$8 sps:$4 sm:$0xff]   ;;  %v87_v3 = vld [vmem:[#allocation2] sm:$0xf]  ;;  %116 = vmatprep.subr.bf16.mxu0 %v706_v1  ;;  %v711_v5 = vld [vmem:[#allocation7] ss:$8 sps:$4 sm:$0xff]  }
  0x4c   :  { %v709_v4 = vld [vmem:[#allocation7 + $0x4] ss:$8 sps:$4 sm:$0xff]   ;;  %117 = vmatpush1.bf16.msra.mxu0 %v708_v2  ;;  %v712_v6 = vld [vmem:[#allocation7 + $0x14] ss:$8 sps:$4 sm:$0xff]   ;;  %v714_v7 = vld [vmem:[#allocation7 + $0x10] ss:$8 sps:$4 sm:$0xff]  }
  0x4d   :  { %365 = vmatprep.subr.bf16.mxu1 %v709_v4  ;;  %v715_v8 = vld [vmem:[#allocation7 + $0x24] ss:$8 sps:$4 sm:$0xff]   ;;  %v717_v9 = vld [vmem:[#allocation7 + $0x20] ss:$8 sps:$4 sm:$0xff]   ;;  %v718_v10 = vld [vmem:[#allocation7 + $0x34] ss:$8 sps:$4 sm:$0xff]  }
  0x4e   :  { %366 = vmatpush1.bf16.msra.mxu1 %v711_v5  ;;  %v720_v11 = vld [vmem:[#allocation7 + $0x30] ss:$8 sps:$4 sm:$0xff]   ;;  %v721_v12 = vld [vmem:[#allocation7 + $0x44] ss:$8 sps:$4 sm:$0xff]   ;;  %v723_v13 = vld [vmem:[#allocation7 + $0x40] ss:$8 sps:$4 sm:$0xff]  }
  0x4f   :  { %622 = vmatmul.mubr.msk.bf16.vlgmr.msra.gmra.mrb[0].mxu0 %vm112_vm0, %v87_v3  ;;  %367 = vmatprep.subr.bf16.mxu1 %v712_v6  ;;  %v724_v14 = vld [vmem:[#allocation7 + $0x54] ss:$8 sps:$4 sm:$0xff]   ;;  %v726_v15 = vld [vmem:[#allocation7 + $0x50] ss:$8 sps:$4 sm:$0xff]   ;;  %v727_v16 = vld [vmem:[#allocation7 + $0x64] ss:$8 sps:$4 sm:$0xff]  }
  0x50   :  { %v729_v17 = vld [vmem:[#allocation7 + $0x60] ss:$8 sps:$4 sm:$0xff]   ;;  %v730_v18 = vld [vmem:[#allocation7 + $0x74] ss:$8 sps:$4 sm:$0xff]   ;;  %v732_v19 = vld [vmem:[#allocation7 + $0x70] ss:$8 sps:$4 sm:$0xff]  }
  0x51   :  { %v733_v20 = vld [vmem:[#allocation7 + $0x84] ss:$8 sps:$4 sm:$0xff]   ;;  %v735_v21 = vld [vmem:[#allocation7 + $0x80] ss:$8 sps:$4 sm:$0xff]   ;;  %v736_v22 = vld [vmem:[#allocation7 + $0x94] ss:$8 sps:$4 sm:$0xff]  }
  0x52   :  { %368 = vmatpush1.bf16.msra.mxu1 %v714_v7  ;;  %v738_v23 = vld [vmem:[#allocation7 + $0x90] ss:$8 sps:$4 sm:$0xff]   ;;  %v739_v24 = vld [vmem:[#allocation7 + $0xa4] ss:$8 sps:$4 sm:$0xff]   ;;  %v741_v25 = vld [vmem:[#allocation7 + $0xa0] ss:$8 sps:$4 sm:$0xff]  }
  0x53   :  { %369 = vmatprep.subr.bf16.mxu1 %v715_v8  ;;  %v742_v26 = vld [vmem:[#allocation7 + $0xb4] ss:$8 sps:$4 sm:$0xff]   ;;  %v744_v27 = vld [vmem:[#allocation7 + $0xb0] ss:$8 sps:$4 sm:$0xff]   ;;  %v745_v28 = vld [vmem:[#allocation7 + $0xc4] ss:$8 sps:$4 sm:$0xff]  }
  0x54   :  { %v747_v29 = vld [vmem:[#allocation7 + $0xc0] ss:$8 sps:$4 sm:$0xff]   ;;  %v748_v30 = vld [vmem:[#allocation7 + $0xd4] ss:$8 sps:$4 sm:$0xff]   ;;  %v750_v31 = vld [vmem:[#allocation7 + $0xd0] ss:$8 sps:$4 sm:$0xff]  }
  0x55   :  { %v751_v32 = vld [vmem:[#allocation7 + $0xe4] ss:$8 sps:$4 sm:$0xff]   ;;  %v753_v33 = vld [vmem:[#allocation7 + $0xe0] ss:$8 sps:$4 sm:$0xff]   ;;  %v754_v34 = vld [vmem:[#allocation7 + $0xf4] ss:$8 sps:$4 sm:$0xff]  }
  0x56   :  { %370 = vmatpush1.bf16.msra.mxu1 %v717_v9  ;;  %v756_v35 = vld [vmem:[#allocation7 + $0xf0] ss:$8 sps:$4 sm:$0xff]   ;;  %v757_v36 = vld [vmem:[#allocation8 + $0x40] sm:$0xff]   ;;  %v759_v38 = vld [vmem:[#allocation8 + $0x48] sm:$0xff]   ;;  %v93_v49 = vshrl.u32 %v92_v48, 7  ;;  %s902_s25 = smov [#allocation10]  }
  0x57   :  { %371 = vmatprep.subr.bf16.mxu1 %v718_v10  ;;  %v758_v37 = vld [vmem:[#allocation8] sm:$0xff]   ;;  %674 = vmatprep.subr.bf16.mxu0 %v757_v36  ;;  %v760_v39 = vld [vmem:[#allocation8 + $0x8] sm:$0xff]   ;;  %v761_v40 = vld [vmem:[#allocation8 + $0x50] sm:$0xff]   ;;  %s609_s0 = sshll.u32 %s902_s25, 4  ;;  %s610_s0 = int_to_ptr.vmem [resolvable:$true] %s609_s0 }
  0x58   :  { %675 = vmatpush3.bf16.msra.mxu0 %v758_v37  ;;  %v762_v41 = vld [vmem:[#allocation8 + $0x10] sm:$0xff]   ;;  %v763_v42 = vld [vmem:[#allocation8 + $0x58] sm:$0xff]   ;;  %v765_v44 = vld [vmem:[#allocation8 + $0x60] sm:$0xff]   ;;  %v94_v50 = vsub.s32 0, %v93_v49  ;;  %v98_v52 = vsub.s32 1, %v93_v49  ;;  %p868_p5 = scmp.lt.s32.totalorder %s610_s0, %s610_s0 }
  0x59   :  { %676 = vmatprep.subr.bf16.mxu0 %v759_v38  ;;  %v764_v43 = vld [vmem:[#allocation8 + $0x18] sm:$0xff]   ;;  %v766_v45 = vld [vmem:[#allocation8 + $0x20] sm:$0xff]   ;;  %v767_v46 = vld [vmem:[#allocation8 + $0x68] sm:$0xff]  }
  0x5a   :  { %372 = vmatpush1.bf16.msra.mxu1 %v720_v11  ;;  %v768_v47 = vld [vmem:[#allocation8 + $0x28] sm:$0xff]   ;;  %v769_v1 = vld [vmem:[#allocation8 + $0x70] sm:$0xff]   ;;  %v771_v3 = vld [vmem:[#allocation8 + $0x78] sm:$0xff]  }
  0x5b   :  { %373 = vmatprep.subr.bf16.mxu1 %v721_v12  ;;  %v90_v51 = vld [vmem:[%s1036_s2] sm:$0x3]  ;;  %v770_v2 = vld [vmem:[#allocation8 + $0x30] sm:$0xff]   ;;  %v772_v4 = vld [vmem:[#allocation8 + $0x38] sm:$0xff]  }
  0x5c   :  { %677 = vmatpush3.bf16.msra.mxu0 %v760_v39  ;;  %v95_v53 = vrot.slane %v90_v51, %v94_v50  ;;  %v99_v54 = vrot.slane %v90_v51, %v98_v52  ;;  %v193_v5 = vld [vmem:[%s1038_s4] sm:$0x3] }
  0x5d   :  { %678 = vmatprep.subr.bf16.mxu0 %v761_v40  ;;  %v198_v6 = vrot.slane %v193_v5, %v94_v50  ;;  %v202_v7 = vrot.slane %v193_v5, %v98_v52 }
  0x5e   :  { %374 = vmatpush1.bf16.msra.mxu1 %v723_v13 }
  0x5f   :  { %375 = vmatprep.subr.bf16.mxu1 %v724_v14 }
  0x60   :  { %679 = vmatpush3.bf16.msra.mxu0 %v762_v41 }
  0x61   :  { %680 = vmatprep.subr.bf16.mxu0 %v763_v42 }
  0x62   :  { %376 = vmatpush1.bf16.msra.mxu1 %v726_v15 }
  0x63   :  { %377 = vmatprep.subr.bf16.mxu1 %v727_v16 }
  0x64   :  { %681 = vmatpush3.bf16.msra.mxu0 %v764_v43 }
  0x65   :  { %682 = vmatprep.subr.bf16.mxu0 %v765_v44 }
  0x66   :  { %378 = vmatpush1.bf16.msra.mxu1 %v729_v17 }
  0x67   :  { %379 = vmatprep.subr.bf16.mxu1 %v730_v18 }
  0x68   :  { %683 = vmatpush3.bf16.msra.mxu0 %v766_v45 }
  0x69   :  { %684 = vmatprep.subr.bf16.mxu0 %v767_v46 }
  0x6a   :  { %380 = vmatpush1.bf16.msra.mxu1 %v732_v19  ;;  %v655_v19 = vld [vmem:[%s1040_s6] ss:$0 sm:$0xff]  ;;  %s863_s6 = scalar_lea.vmem %s610_s0, 128 }
  0x6b   :  { %381 = vmatprep.subr.bf16.mxu1 %v733_v20  ;;  %p864_p4 = scmp.ne.s32.totalorder %s610_s0, %s863_s6  ;;  %p869_p6 = scmp.lt.s32.totalorder %s863_s6, %s863_s6 }
  0x6c   :  { %685 = vmatpush3.bf16.msra.mxu0 %v768_v47 }
  0x6d   :  { %686 = vmatprep.subr.bf16.mxu0 %v769_v1  ;;  %p870_p7 = por %p869_p6, %p868_p5 }
  0x6e   :  { %382 = vmatpush1.bf16.msra.mxu1 %v735_v21 }
  0x6f   :  { %383 = vmatprep.subr.bf16.mxu1 %v736_v22  ;;  %p871_p8 = pnand %p870_p7, %p864_p4 }
  0x70   :  { %687 = vmatpush3.bf16.msra.mxu0 %v770_v2 }
  0x71   :  { %688 = vmatprep.subr.bf16.mxu0 %v771_v3 }
  0x72   :  { %384 = vmatpush1.bf16.msra.mxu1 %v738_v23 }
  0x73   :  { %385 = vmatprep.subr.bf16.mxu1 %v739_v24 }
  0x74   :  { %689 = vmatpush3.bf16.msra.mxu0 %v772_v4 }
  0x76   :  { %386 = vmatpush1.bf16.msra.mxu1 %v741_v25  ;;  %v672_v25 = vld [vmem:[%s1041_s7] ss:$0 sm:$0xff] }
  0x77   :  { %387 = vmatprep.subr.bf16.mxu1 %v742_v26 }
  0x7a   :  { %388 = vmatpush1.bf16.msra.mxu1 %v744_v27  ;;  %v673_v27 = vld [vmem:[%s1042_s8] ss:$0 sm:$0xff] }
  0x7b   :  { %389 = vmatprep.subr.bf16.mxu1 %v745_v28 }
  0x7e   :  { %390 = vmatpush1.bf16.msra.mxu1 %v747_v29 }
  0x7f   :  { %391 = vmatprep.subr.bf16.mxu1 %v748_v30 }
  0x82   :  { %392 = vmatpush1.bf16.msra.mxu1 %v750_v31 }
  0x83   :  { %393 = vmatprep.subr.bf16.mxu1 %v751_v32 }
  0x86   :  { %394 = vmatpush1.bf16.msra.mxu1 %v753_v33 }
  0x87   :  { %395 = vmatprep.subr.bf16.mxu1 %v754_v34 }
  0x8a   :  { %396 = vmatpush1.bf16.msra.mxu1 %v756_v35 }
 0x122   :  { %v150_v55 = vpop.f32.mrb[0].mxu0 }
 0x123   :  { %v151_v56 = vadd.f32 %v150_v55, %v95_v53  ;;  %v152_v57 = vpop.f32.mrb[1].mxu0 }
 0x124   :  { %v153_v58 = vadd.f32 %v152_v57, %v99_v54  ;;  %v154_v59 = vpop.f32.mrb[2].mxu0 }
 0x125   :  { %v157_v60 = vmax.f32 %v151_v56, 0.0  ;;  %v155_v61 = vpop.f32.mrb[3].mxu0 }
 0x126   :  { %v158_v62 = vmax.f32 %v153_v58, 0.0 }
 0x127   :  { %v159_v0 = vpack.c.bf16 %v157_v60, %v157_v60 }
 0x128   :  { %v160_v63 = vpack.c.bf16 %v158_v62, %v158_v62 }
 0x12a   :  { %397 = vmatprep.mubr.bf16.mxu1 %v160_v63 }
 0x12b   :  { %398 = vmatmul.mubr.bf16.vlgmr.msra.gmra.mrb[0].mxu1 %v159_v0 }
 0x1fe   :  { %v399_v8 = vpop.f32.mrb[0].mxu1 }
 0x1ff   :  { %v400_v9 = vadd.f32 %v399_v8, %v198_v6  ;;  %v401_v10 = vpop.f32.mrb[1].mxu1 }
 0x200   :  { %v402_v11 = vadd.f32 %v401_v10, %v202_v7  ;;  %v403_v12 = vpop.f32.mrb[2].mxu1 }
 0x201   :  { %v406_v13 = vmax.f32 %v400_v9, 0.0  ;;  %v404_v14 = vpop.f32.mrb[3].mxu1 }
 0x202   :  { %v407_v15 = vmax.f32 %v402_v11, 0.0 }
 0x203   :  { %v408_v17 = vpack.c.bf16 %v406_v13, %v406_v13 }
 0x204   :  { %v409_v16 = vpack.c.bf16 %v407_v15, %v407_v15 }
 0x206   :  { %577 = vmatprep.mubr.bf16.mxu0 %v409_v16 }
 0x207   :  { %578 = vmatmul.mubr.bf16.vlgmr.msra.gmra.mrb[4].mxu0 %v408_v17 }
 0x2da   :  { %v690_v18 = vpop.f32.mrb[4].mxu0 }
 0x2db   :  { %v691_v20 = vpop.f32.mrb[5].mxu0 }
 0x2dc   :  { %v692_v21 = vadd.f32 %v691_v20, %v690_v18  ;;  %v693_v22 = vpop.f32.mrb[6].mxu0 }
 0x2dd   :  { %v694_v23 = vpop.f32.mrb[7].mxu0 }
 0x2de   :  { %v580_v24 = vadd.f32 %v692_v21, %v655_v19 }
 0x2e0   :  { %773 = vtanh.f32 %v580_v24 }
 0x2ea   :  { %v774_v26 = vpop.eup %773 }
 0x2eb   :  { %v593_v28 = vmul.f32 %v774_v26, %v672_v25 }
 0x2ed   :  { %v601_v29 = vadd.f32 %v673_v27, %v593_v28 }
 0x2ef   :  { %602 = vst [vmem:[#allocation10] sm:$0xff] %v601_v29 }
 0x2f0   :  { %874 = shalt.err (!%p871_p8)
}
 0x2f1   :  { %s875_s27 = scalar_lea.hbm %s1043_s9, 128 }
 0x2f2   :  { %p876_p9 = scmp.ne.s32.totalorder %s1043_s9, %s875_s27  ;;  %p879_p10 = scmp.lt.u32.totalorder %s875_s27, %s1043_s9 }
 0x2f4   :  { %p881_p11 = pnand %p879_p10, %p876_p9 }
 0x2f6   :  { %884 = shalt.err (!%p881_p11)
}
 0x2f7   :  { %612 = dma.vmem_to_hbm [thread:$0]  %s610_s0, 128, %s1043_s9, [#allocation4]  }
 0x2f8   :  { %891 = dma.done.wait [#allocation4], 128  }
 0x2f9   :  { %892 = vsyncadd [#allocation4], 4294967168 }
 0x2fa   :  { %616 = vsyncpa [#allocation3], 1 }
 0x2fb   :  { %617 = vsyncpa [#allocation6], 1 }
 0x2fc   :  { %618 = vsyncpa [#allocation9], 1 }
 0x2fd   :  { %619 = vsyncpa [#allocation4], 1 }

</bundles_post_ra>
